<compile_context>
chip_gen: v7x
topology: tpu7x:2x2x1
jax: 0.10.0
libtpu: 0.0.40
codegen_flags: <defaults>
</compile_context>

<pallas_src>
import functools
import math

import jax
import jax.numpy as jnp
from jax import lax
from jax.experimental import pallas as pl
from jax.experimental.pallas import tpu as pltpu

_LANE = 128
_SUBLANE = 8


def _bce_mean_kernel(p_ref, y_ref, out_ref, acc_ref, *,
                     total_elems, valid_rows, tile_rows, mask_rows):
    i = pl.program_id(0)

    @pl.when(i == 0)
    def _():
        acc_ref[...] = jnp.zeros_like(acc_ref)

    p = p_ref[...].astype(jnp.float32)
    y = y_ref[...].astype(jnp.float32)

    # PyTorch binary_cross_entropy clamps each log term at -100 so p==0 / p==1
    # contribute finite values (and y==0 / y==1 zero them out correctly).
    log_p = jnp.maximum(jnp.log(p), jnp.float32(-100.0))
    log_1mp = jnp.maximum(jnp.log1p(-p), jnp.float32(-100.0))
    loss = -(y * log_p + (1.0 - y) * log_1mp)

    if mask_rows:
        # The last grid step may read past the end of the array (unspecified
        # data, possibly NaN after the logs); zero those rows before summing.
        row_ids = i * tile_rows + lax.broadcasted_iota(jnp.int32, loss.shape, 0)
        loss = jnp.where(row_ids < valid_rows, loss, jnp.float32(0.0))

    # Pure element-wise VPU add per step; all XLU/scalar work is in the epilogue.
    acc_ref[...] += loss

    @pl.when(i == pl.num_programs(0) - 1)
    def _():
        out_ref[0, 0] = jnp.sum(acc_ref[...]) / jnp.float32(total_elems)


def reldn_bce_loss(cls_score, label, *, tile_rows=1024):
    """mean(BCE(cls_score, label)) over all elements. Accepts f32 or bf16 inputs."""
    assert cls_score.shape == label.shape
    total = math.prod(cls_score.shape)
    assert total > 0

    # Lane-dense repack (free flat reshape) when the element count allows it;
    # otherwise keep the trailing class dim as the (full-extent) lane dim.
    if total % _LANE == 0:
        rows, cols = total // _LANE, _LANE
    elif cls_score.ndim >= 2:
        cols = cls_score.shape[-1]
        rows = total // cols
    else:
        rows, cols = 1, total
    p2 = cls_score.reshape(rows, cols)
    y2 = label.reshape(rows, cols)

    # Row tile: as large as practical; must be a multiple of 8 sublanes unless it
    # spans the whole row extent.
    tile_rows = max(_SUBLANE, (tile_rows // _SUBLANE) * _SUBLANE)
    tile_r = rows if rows <= tile_rows else tile_rows

    grid = (pl.cdiv(rows, tile_r),)
    mask_rows = (rows % tile_r) != 0

    kernel = functools.partial(
        _bce_mean_kernel,
        total_elems=total,
        valid_rows=rows,
        tile_rows=tile_r,
        mask_rows=mask_rows,
    )

    out = pl.pallas_call(
        kernel,
        out_shape=jax.ShapeDtypeStruct((1, 1), jnp.float32),
        grid_spec=pltpu.PrefetchScalarGridSpec(
            num_scalar_prefetch=0,
            grid=grid,
            in_specs=[
                pl.BlockSpec((tile_r, cols), lambda i: (i, 0)),
                pl.BlockSpec((tile_r, cols), lambda i: (i, 0)),
            ],
            out_specs=pl.BlockSpec(
                (1, 1), lambda i: (0, 0), memory_space=pltpu.SMEM
            ),
            scratch_shapes=[pltpu.VMEM((tile_r, cols), jnp.float32)],
        ),
        compiler_params=pltpu.CompilerParams(
            # Single reduction axis carrying the running-sum accumulator.
            dimension_semantics=("arbitrary",),
        ),
    )(p2, y2)
    # TODO(synk): optional v7x megacore split (2-way 'parallel' leading axis with
    # per-core partial sums) is worthwhile only for very large N*C.
    return out[0, 0]


if __name__ == "__main__":
    key = jax.random.PRNGKey(0)
    k1, k2 = jax.random.split(key)

    def bce_ref(p, y):
        p = p.astype(jnp.float32)
        y = y.astype(jnp.float32)
        return jnp.mean(
            -(y * jnp.maximum(jnp.log(p), -100.0)
              + (1.0 - y) * jnp.maximum(jnp.log1p(-p), -100.0)))

    # Case 1: [num_pairs, num_rel_classes] with lane-aligned class count.
    N, C = 64, 128
    cls_score = jax.nn.sigmoid(jax.random.normal(k1, (N, C), dtype=jnp.float32))
    label = (jax.random.uniform(k2, (N, C)) > 0.5).astype(jnp.float32)
    loss = jax.block_until_ready(reldn_bce_loss(cls_score, label))
    ref = bce_ref(cls_score, label)
    assert jnp.allclose(loss, ref, rtol=1e-5, atol=1e-6), (loss, ref)

    # Case 2: awkward shape (37 pairs x 51 relation classes) with a small row tile
    # so the cdiv grid + masked partial last tile path is exercised.
    N2, C2 = 37, 51
    k3, k4 = jax.random.split(k1)
    p2 = jax.nn.sigmoid(jax.random.normal(k3, (N2, C2), dtype=jnp.float32))
    y2 = (jax.random.uniform(k4, (N2, C2)) > 0.5).astype(jnp.float32)
    loss2 = jax.block_until_ready(reldn_bce_loss(p2, y2, tile_rows=16))
    ref2 = bce_ref(p2, y2)
    assert jnp.allclose(loss2, ref2, rtol=1e-5, atol=1e-6), (loss2, ref2)

    # Case 3: bf16 inputs end-to-end (half the HBM traffic; f32 accumulation).
    p3 = cls_score.astype(jnp.bfloat16)
    y3 = label.astype(jnp.bfloat16)
    loss3 = jax.block_until_ready(reldn_bce_loss(p3, y3))
    ref3 = bce_ref(p3, y3)
    assert jnp.allclose(loss3, ref3, rtol=1e-4, atol=1e-5), (loss3, ref3)

    print("KERNEL_OK")
</pallas_src>

<mosaic_0001>
module attributes {stable_mosaic.version = 11 : i64} {
  func.func @_bce_mean_kernel(%arg0: i32, %arg1: memref<64x128xf32, #tpu.memory_space<vmem>>, %arg2: memref<64x128xf32, #tpu.memory_space<vmem>>, %arg3: memref<1x1xf32, #tpu.memory_space<smem>>, %arg4: memref<64x128xf32, #tpu.memory_space<vmem>>) attributes {dimension_semantics = [#tpu.dimension_semantics<arbitrary>], iteration_bounds = array<i64: 1>, scalar_prefetch = 0 : i64, scratch_operands = 1 : i64, tpu.core_type = #tpu.core_type<tc>, window_params = [{transform_indices = @transform_0, window_bounds = array<i64: 64, 128>}, {transform_indices = @transform_1, window_bounds = array<i64: 64, 128>}, {transform_indices = @transform_2, window_bounds = array<i64: 1, 1>}]} {
    %c0_i32 = arith.constant 0 : i32
    %0 = arith.cmpi eq, %arg0, %c0_i32 : i32
    %1 = arith.extui %0 : i1 to i32
    %c0_i32_0 = arith.constant 0 : i32
    %2 = arith.cmpi ne, %1, %c0_i32_0 : i32
    scf.if %2 {
      %cst_14 = arith.constant 0.000000e+00 : f32
      %26 = vector.broadcast %cst_14 : f32 to vector<64x128xf32>
      %c0_15 = arith.constant 0 : index
      %c0_16 = arith.constant 0 : index
      %27 = vector.load %arg4[%c0_15, %c0_16] : memref<64x128xf32, #tpu.memory_space<vmem>>, vector<64x128xf32>
      tpu.vector_store %arg4[%c0_15, %c0_16], %26 {strides = array<i32>} : memref<64x128xf32, #tpu.memory_space<vmem>>, vector<64x128xf32>,
    } else {
    }
    %c0 = arith.constant 0 : index
    %c0_1 = arith.constant 0 : index
    %3 = vector.load %arg1[%c0, %c0_1] : memref<64x128xf32, #tpu.memory_space<vmem>>, vector<64x128xf32>
    %c0_2 = arith.constant 0 : index
    %c0_3 = arith.constant 0 : index
    %4 = vector.load %arg2[%c0_2, %c0_3] : memref<64x128xf32, #tpu.memory_space<vmem>>, vector<64x128xf32>
    %5 = math.log %3 : vector<64x128xf32>
    %cst = arith.constant -1.000000e+02 : f32
    %6 = vector.broadcast %cst : f32 to vector<64x128xf32>
    %7 = arith.maximumf %5, %6 : vector<64x128xf32>
    %cst_4 = arith.constant 0.000000e+00 : f32
    %8 = vector.broadcast %cst_4 : f32 to vector<64x128xf32>
    %9 = arith.subf %8, %3 : vector<64x128xf32>
    %10 = math.log1p %9 : vector<64x128xf32>
    %cst_5 = arith.constant -1.000000e+02 : f32
    %11 = vector.broadcast %cst_5 : f32 to vector<64x128xf32>
    %12 = arith.maximumf %10, %11 : vector<64x128xf32>
    %13 = arith.mulf %4, %7 : vector<64x128xf32>
    %cst_6 = arith.constant 1.000000e+00 : f32
    %14 = vector.broadcast %cst_6 : f32 to vector<64x128xf32>
    %15 = arith.subf %14, %4 : vector<64x128xf32>
    %16 = arith.mulf %15, %12 : vector<64x128xf32>
    %17 = arith.addf %13, %16 : vector<64x128xf32>
    %cst_7 = arith.constant 0.000000e+00 : f32
    %18 = vector.broadcast %cst_7 : f32 to vector<64x128xf32>
    %19 = arith.subf %18, %17 : vector<64x128xf32>
    %c0_8 = arith.constant 0 : index
    %c0_9 = arith.constant 0 : index
    %20 = vector.load %arg4[%c0_8, %c0_9] : memref<64x128xf32, #tpu.memory_space<vmem>>, vector<64x128xf32>
    %21 = arith.addf %20, %19 : vector<64x128xf32>
    %c0_10 = arith.constant 0 : index
    %c0_11 = arith.constant 0 : index
    %22 = vector.load %arg4[%c0_10, %c0_11] : memref<64x128xf32, #tpu.memory_space<vmem>>, vector<64x128xf32>
    tpu.vector_store %arg4[%c0_10, %c0_11], %21 {strides = array<i32>} : memref<64x128xf32, #tpu.memory_space<vmem>>, vector<64x128xf32>,
    %c0_i32_12 = arith.constant 0 : i32
    %23 = arith.cmpi eq, %arg0, %c0_i32_12 : i32
    %24 = arith.extui %23 : i1 to i32
    %c0_i32_13 = arith.constant 0 : i32
    %25 = arith.cmpi ne, %24, %c0_i32_13 : i32
    scf.if %25 {
      %c0_14 = arith.constant 0 : index
      %c0_15 = arith.constant 0 : index
      %26 = vector.load %arg4[%c0_14, %c0_15] : memref<64x128xf32, #tpu.memory_space<vmem>>, vector<64x128xf32>
      %27 = vector.shape_cast %26 : vector<64x128xf32> to vector<1x64x128xf32>
      %cst_16 = arith.constant dense<0.000000e+00> : vector<1xf32>
      %28 = vector.multi_reduction <add>, %27, %cst_16 [1, 2] : vector<1x64x128xf32> to vector<1xf32>
      %29 = vector.shape_cast %28 : vector<1xf32> to vector<1x1x1xf32>
      %30 = vector.extract %29[0, 0, 0] : f32 from vector<1x1x1xf32>
      %cst_17 = arith.constant 8.192000e+03 : f32
      %31 = arith.divf %30, %cst_17 : f32
      %c0_18 = arith.constant 0 : index
      %c0_19 = arith.constant 0 : index
      %32 = memref.load %arg3[%c0_18, %c0_19] : memref<1x1xf32, #tpu.memory_space<smem>>
      memref.store %31, %arg3[%c0_18, %c0_19] : memref<1x1xf32, #tpu.memory_space<smem>>
    } else {
    }
    return
  }
  func.func @transform_0(%arg0: i32) -> (i32, i32) {
    %c0_i32 = arith.constant 0 : i32
    %c0_i32_0 = arith.constant 0 : i32
    return %arg0, %c0_i32 : i32, i32
  }
  func.func @transform_1(%arg0: i32) -> (i32, i32) {
    %c0_i32 = arith.constant 0 : i32
    %c0_i32_0 = arith.constant 0 : i32
    return %arg0, %c0_i32 : i32, i32
  }
  func.func @transform_2(%arg0: i32) -> (i32, i32) {
    %c0_i32 = arith.constant 0 : i32
    %c0_i32_0 = arith.constant 0 : i32
    %c0_i32_1 = arith.constant 0 : i32
    return %c0_i32, %c0_i32_0 : i32, i32
  }
}

</mosaic_0001>

<bundles_post_ra>
// kernel: tpu_custom_call.1
= control target key start
LH: loop header
LB: loop body
LE: loop exit
PB: predicated region body
PF: predicated region fallthrough
CT: control target
= control target key end

     0   :  { %7 = vsyncpa [#allocation4], 0  ;;  %s552_s0 = inlined_call_operand.hbm [shape: f32[64,128], index: 0, kind: input, shape index: {}]   ;;  %s553_s1 = inlined_call_operand.hbm [shape: f32[64,128], index: 1, kind: input, shape index: {}]   ;;  %s554_s2 = inlined_call_operand.hbm [shape: f32[1,1], index: 2, kind: output, shape index: {}]  }
   0x1   :  { %8 = vsyncpa [#allocation7], 0 }
   0x2   :  { %9 = vsyncpa [#allocation5], 0  ;;  %s390_s9 = smov [#allocation3]   ;;  %s330_s13 = scalar_lea.hbm %s552_s0, 1024 }
   0x3   :  { %s15_s10 = sshll.u32 %s390_s9, 4  ;;  %p331_p0 = scmp.ne.s32.totalorder %s552_s0, %s330_s13  ;;  %s16_s10 = int_to_ptr.vmem [resolvable:$true] %s15_s10 }
   0x4   :  { %p334_p1 = scmp.lt.u32.totalorder %s330_s13, %s552_s0 }
   0x6   :  { %p336_p2 = pnand %p334_p1, %p331_p0 }
   0x8   :  { %339 = shalt.err (!%p336_p2)
}
   0x9   :  { %s340_s18 = scalar_lea.vmem %s16_s10, 1024  ;;  %p345_p4 = scmp.lt.s32.totalorder %s16_s10, %s16_s10 }
   0xa   :  { %p341_p3 = scmp.ne.s32.totalorder %s16_s10, %s340_s18  ;;  %p346_p5 = scmp.lt.s32.totalorder %s340_s18, %s340_s18 }
   0xc   :  { %p347_p6 = por %p346_p5, %p345_p4 }
   0xe   :  { %p348_p7 = pnand %p347_p6, %p341_p3 }
  0x10   :  { %351 = shalt.err (!%p348_p7)
}
  0x11   :  { %s391_s19 = smov 128   ;;  %s392_s20 = smov 8  }
  0x12   :  { %21 = dma.hbm_to_vmem [thread:$0]  %s552_s0, 1024, %s16_s10, [#allocation4], %s391_s19, %s391_s19, %s392_s20  }
  0x13   :  { %s393_s23 = smov [#allocation6]   ;;  %s352_s27 = scalar_lea.hbm %s553_s1, 1024 }
  0x14   :  { %s27_s24 = sshll.u32 %s393_s23, 4  ;;  %p353_p8 = scmp.ne.s32.totalorder %s553_s1, %s352_s27  ;;  %s28_s24 = int_to_ptr.vmem [resolvable:$true] %s27_s24 }
  0x15   :  { %p356_p9 = scmp.lt.u32.totalorder %s352_s27, %s553_s1 }
  0x17   :  { %p358_p10 = pnand %p356_p9, %p353_p8 }
  0x19   :  { %361 = shalt.err (!%p358_p10)
}
  0x1a   :  { %s362_s4 = scalar_lea.vmem %s28_s24, 1024  ;;  %p367_p12 = scmp.lt.s32.totalorder %s28_s24, %s28_s24 }
  0x1b   :  { %p363_p11 = scmp.ne.s32.totalorder %s28_s24, %s362_s4  ;;  %p368_p13 = scmp.lt.s32.totalorder %s362_s4, %s362_s4 }
  0x1d   :  { %p369_p0 = por %p368_p13, %p367_p12 }
  0x1f   :  { %p370_p1 = pnand %p369_p0, %p363_p11 }
  0x21   :  { %373 = shalt.err (!%p370_p1)
}
  0x22   :  { %33 = dma.hbm_to_vmem [thread:$0]  %s553_s1, 1024, %s28_s24, [#allocation7], %s391_s19, %s391_s19, %s392_s20  }
  0x23   :  { %384 = dma.done.wait [#allocation4], 1024  }
  0x24   :  { %385 = vsyncadd [#allocation4], 4294966272 }
  0x25   :  { %386 = dma.done.wait [#allocation7], 1024  }
  0x26   :  { %387 = vsyncadd [#allocation7], 4294966272  ;;  %v52_v0 = vld [vmem:[#allocation3] sm:$0xff]  ;;  %v53_v1 = vld [vmem:[#allocation3 + $0x8] sm:$0xff]  ;;  %s374_s9 = scalar_lea.hbm %s554_s2, 16 }
  0x27   :  { %v54_v2 = vld [vmem:[#allocation3 + $0x10] sm:$0xff]  ;;  %v55_v3 = vld [vmem:[#allocation3 + $0x18] sm:$0xff]  ;;  %v56_v4 = vld [vmem:[#allocation3 + $0x20] sm:$0xff]  ;;  %298 = vlog2.f32 %v52_v0  ;;  %v92_v5 = vsub.f32 0.0, %v52_v0  ;;  %v93_v7 = vsub.f32 0.0, %v53_v1  ;;  %p375_p2 = scmp.ne.s32.totalorder %s554_s2, %s374_s9  ;;  %p378_p3 = scmp.lt.u32.totalorder %s374_s9, %s554_s2 }
  0x28   :  { %v57_v6 = vld [vmem:[#allocation3 + $0x28] sm:$0xff]  ;;  %300 = vlog2.f32 %v53_v1  ;;  %v58_v8 = vld [vmem:[#allocation3 + $0x30] sm:$0xff]  ;;  %v94_v9 = vsub.f32 0.0, %v54_v2  ;;  %v95_v10 = vsub.f32 0.0, %v55_v3  ;;  %v96_v11 = vsub.f32 0.0, %v56_v4  ;;  %v59_v19 = vld [vmem:[#allocation3 + $0x38] sm:$0xff] }
  0x29   :  { %302 = vlog2.f32 %v54_v2  ;;  %v103_v12 = vmul.f32 -0.5, %v92_v5  ;;  %v434_v13 = vsub.f32 0.0, %v57_v6  ;;  %v100_v14 = vadd.f32 1.0, %v92_v5  ;;  %v60_v34 = vld [vmem:[#allocation6] sm:$0xff]  ;;  %p380_p4 = pnand %p378_p3, %p375_p2 }
  0x2a   :  { %304 = vlog2.f32 %v55_v3  ;;  %v112_v15 = vmul.f32 -0.5, %v93_v7  ;;  %v436_v16 = vsub.f32 0.0, %v58_v8  ;;  %v106_v17 = vand.u32 2147483647, %v92_v5 }
  0x2b   :  { %306 = vlog2.f32 %v56_v4  ;;  %v109_v18 = vadd.f32 1.0, %v93_v7  ;;  %v104_v20 = vadd.f32 1.0, %v103_v12  ;;  %v118_v21 = vadd.f32 1.0, %v94_v9 }
  0x2c   :  { %308 = vlog2.f32 %v57_v6  ;;  %v121_v22 = vmul.f32 -0.5, %v94_v9  ;;  %v113_v23 = vadd.f32 1.0, %v112_v15  ;;  %v115_v24 = vand.u32 2147483647, %v93_v7 }
  0x2d   :  { %310 = vlog2.f32 %v58_v8  ;;  %v127_v25 = vadd.f32 1.0, %v95_v10  ;;  %v124_v27 = vand.u32 2147483647, %v94_v9  ;;  %v130_v28 = vmul.f32 -0.5, %v95_v10 }
  0x2e   :  { %312 = vlog2.f32 %v59_v19  ;;  %v122_v26 = vadd.f32 1.0, %v121_v22  ;;  %v438_v29 = vsub.f32 0.0, %v59_v19  ;;  %v133_v30 = vand.u32 2147483647, %v95_v10 }
  0x2f   :  { %314 = vlog2.f32 %v100_v14  ;;  %v136_v31 = vadd.f32 1.0, %v96_v11  ;;  %v440_v33 = vmul.f32 %v104_v20, %v92_v5  ;;  %vm442_vm0 = vcmp.lt.f32.partialorder %v106_v17, 0.0004427343 }
  0x30   :  { %316 = vlog2.f32 %v109_v18  ;;  %v131_v35 = vadd.f32 1.0, %v130_v28  ;;  %v139_v36 = vmul.f32 -0.5, %v96_v11  ;;  %v448_v39 = vmul.f32 %v113_v23, %v93_v7 }
  0x31   :  { %v299_v32 = vpop.eup %298  ;;  %318 = vlog2.f32 %v118_v21  ;;  %vm450_vm1 = vcmp.lt.f32.partialorder %v115_v24, 0.0004427343  ;;  %v142_v41 = vand.u32 2147483647, %v96_v11  ;;  %v456_v44 = vmul.f32 %v122_v26, %v94_v9 }
  0x32   :  { %v301_v37 = vpop.eup %300  ;;  %v446_v38 = vmul.f32 0.6931472, %v299_v32  ;;  %320 = vlog2.f32 %v127_v25  ;;  %vm458_vm2 = vcmp.lt.f32.partialorder %v124_v27, 0.0004427343  ;;  %v140_v46 = vadd.f32 1.0, %v139_v36 }
  0x33   :  { %v303_v42 = vpop.eup %302  ;;  %v454_v43 = vmul.f32 0.6931472, %v301_v37  ;;  %322 = vlog2.f32 %v136_v31  ;;  %v464_v49 = vmul.f32 %v131_v35, %v95_v10  ;;  %vm466_vm3 = vcmp.lt.f32.partialorder %v133_v30, 0.0004427343 }
  0x34   :  { %v305_v47 = vpop.eup %304  ;;  %v462_v48 = vmul.f32 0.6931472, %v303_v42  ;;  %v145_v51 = vadd.f32 1.0, %v434_v13  ;;  %v84_v54 = vmax.f32 %v446_v38, -100.0  ;;  %vm474_vm4 = vcmp.lt.f32.partialorder %v142_v41, 0.0004427343 }
  0x35   :  { %v307_v52 = vpop.eup %306  ;;  %v471_v53 = vmul.f32 0.6931472, %v305_v47  ;;  %v148_v56 = vmul.f32 -0.5, %v434_v13  ;;  %v85_v59 = vmax.f32 %v454_v43, -100.0  ;;  %v151_v60 = vand.u32 2147483647, %v434_v13 }
  0x36   :  { %v309_v57 = vpop.eup %308  ;;  %v479_v58 = vmul.f32 0.6931472, %v307_v52  ;;  %324 = vlog2.f32 %v145_v51  ;;  %v141_v63 = vmul.f32 %v140_v46, %v96_v11  ;;  %v154_v1 = vadd.f32 1.0, %v436_v16  ;;  %v61_v43 = vld [vmem:[#allocation6 + $0x8] sm:$0xff] }
  0x37   :  { %v311_v61 = vpop.eup %310  ;;  %v483_v62 = vmul.f32 0.6931472, %v309_v57  ;;  %v149_v0 = vadd.f32 1.0, %v148_v56  ;;  %v86_v4 = vmax.f32 %v462_v48, -100.0  ;;  %v87_v5 = vmax.f32 %v471_v53, -100.0  ;;  %v63_v48 = vld [vmem:[#allocation6 + $0x18] sm:$0xff] }
  0x38   :  { %v313_v2 = vpop.eup %312  ;;  %v486_v3 = vmul.f32 0.6931472, %v311_v61  ;;  %v157_v6 = vmul.f32 -0.5, %v436_v16  ;;  %v88_v9 = vmax.f32 %v479_v58, -100.0  ;;  %vm494_vm5 = vcmp.lt.f32.partialorder %v151_v60, 0.0004427343 }
  0x39   :  { %v315_v7 = vpop.eup %314  ;;  %v491_v8 = vmul.f32 0.6931472, %v313_v2  ;;  %326 = vlog2.f32 %v154_v1  ;;  %v89_v12 = vmax.f32 %v483_v62, -100.0  ;;  %v150_v15 = vmul.f32 %v149_v0, %v434_v13  ;;  %v65_v53 = vld [vmem:[#allocation6 + $0x28] sm:$0xff]  ;;  %v66_v56 = vld [vmem:[#allocation6 + $0x30] sm:$0xff] }
  0x3a   :  { %v317_v11 = vpop.eup %316  ;;  %v102_v14 = vmul.f32 0.6931472, %v315_v7  ;;  %v158_v17 = vadd.f32 1.0, %v157_v6  ;;  %v160_v20 = vand.u32 2147483647, %v436_v16  ;;  %v163_v21 = vadd.f32 1.0, %v438_v29 }
  0x3b   :  { %v319_v18 = vpop.eup %318  ;;  %v111_v19 = vmul.f32 0.6931472, %v317_v11  ;;  %v166_v22 = vmul.f32 -0.5, %v438_v29  ;;  %v90_v24 = vmax.f32 %v486_v3, -100.0  ;;  %v91_v25 = vmax.f32 %v491_v8, -100.0 }
  0x3c   :  { %v321_v23 = vpop.eup %320  ;;  %v108_v26 = vsel %vm442_vm0, %v440_v33, %v102_v14  ;;  %v120_v27 = vmul.f32 0.6931472, %v319_v18  ;;  %328 = vlog2.f32 %v163_v21  ;;  %v159_v36 = vmul.f32 %v158_v17, %v436_v16  ;;  %v67_v17 = vld [vmem:[#allocation6 + $0x38] sm:$0xff] }
  0x3d   :  { %v323_v13 = vpop.eup %322  ;;  %v117_v28 = vsel %vm450_vm1, %v448_v39, %v111_v19  ;;  %v129_v30 = vmul.f32 0.6931472, %v321_v23  ;;  %v167_v31 = vadd.f32 1.0, %v166_v22  ;;  %v169_v37 = vand.u32 2147483647, %v438_v29 }
  0x3e   :  { %v126_v32 = vsel %vm458_vm2, %v456_v44, %v120_v27  ;;  %v138_v35 = vmul.f32 0.6931472, %v323_v13  ;;  %vm519_vm6 = vcmp.lt.f32.partialorder %v160_v20, 0.0004427343  ;;  %v172_v41 = vmax.f32 %v108_v26, -100.0  ;;  %v62_v44 = vld [vmem:[#allocation6 + $0x10] sm:$0xff] }
  0x3f   :  { %v135_v33 = vsel %vm466_vm3, %v464_v49, %v129_v30  ;;  %v168_v39 = vmul.f32 %v167_v31, %v438_v29  ;;  %vm526_vm7 = vcmp.lt.f32.partialorder %v169_v37, 0.0004427343  ;;  %v173_v46 = vmax.f32 %v117_v28, -100.0  ;;  %v64_v49 = vld [vmem:[#allocation6 + $0x20] sm:$0xff] }
  0x40   :  { %v325_v42 = vpop.eup %324  ;;  %v144_v16 = vsel %vm474_vm4, %v141_v63, %v138_v35  ;;  %v174_v47 = vmax.f32 %v126_v32, -100.0  ;;  %v175_v51 = vmax.f32 %v135_v33, -100.0  ;;  %v180_v29 = vmul.f32 %v84_v54, %v60_v34 }
  0x41   :  { %v147_v50 = vmul.f32 0.6931472, %v325_v42  ;;  %v176_v52 = vmax.f32 %v144_v16, -100.0  ;;  %v181_v57 = vmul.f32 %v85_v59, %v61_v43  ;;  %v182_v58 = vmul.f32 %v86_v4, %v62_v44 }
  0x42   :  { %v183_v55 = vmul.f32 %v87_v5, %v63_v48  ;;  %v184_v60 = vmul.f32 %v88_v9, %v64_v49  ;;  %v185_v63 = vmul.f32 %v89_v12, %v65_v53  ;;  %v188_v0 = vsub.f32 1.0, %v60_v34 }
  0x43   :  { %v327_v61 = vpop.eup %326  ;;  %v153_v62 = vsel %vm494_vm5, %v150_v15, %v147_v50  ;;  %v189_v1 = vsub.f32 1.0, %v61_v43  ;;  %v190_v6 = vsub.f32 1.0, %v62_v44  ;;  %v191_v7 = vsub.f32 1.0, %v63_v48 }
  0x44   :  { %v156_v2 = vmul.f32 0.6931472, %v327_v61  ;;  %v177_v3 = vmax.f32 %v153_v62, -100.0  ;;  %v186_v11 = vmul.f32 %v90_v24, %v66_v56  ;;  %v192_v38 = vsub.f32 1.0, %v64_v49 }
  0x45   :  { %v193_v54 = vsub.f32 1.0, %v65_v53  ;;  %v194_v14 = vsub.f32 1.0, %v66_v56  ;;  %v196_v4 = vmul.f32 %v188_v0, %v172_v41  ;;  %v197_v5 = vmul.f32 %v189_v1, %v173_v46 }
  0x46   :  { %v162_v59 = vsel %vm519_vm6, %v159_v36, %v156_v2  ;;  %v198_v9 = vmul.f32 %v190_v6, %v174_v47  ;;  %v329_v10 = vpop.eup %328  ;;  %v199_v12 = vmul.f32 %v191_v7, %v175_v51  ;;  %v200_v18 = vmul.f32 %v192_v38, %v176_v52 }
  0x47   :  { %v178_v15 = vmax.f32 %v162_v59, -100.0  ;;  %v201_v19 = vmul.f32 %v193_v54, %v177_v3  ;;  %v165_v20 = vmul.f32 0.6931472, %v329_v10  ;;  %v204_v21 = vadd.f32 %v196_v4, %v180_v29 }
  0x48   :  { %v205_v22 = vadd.f32 %v197_v5, %v181_v57  ;;  %v206_v23 = vadd.f32 %v198_v9, %v182_v58  ;;  %v195_v24 = vsub.f32 1.0, %v67_v17  ;;  %v207_v27 = vadd.f32 %v199_v12, %v183_v55 }
  0x49   :  { %v202_v26 = vmul.f32 %v194_v14, %v178_v15  ;;  %v208_v13 = vadd.f32 %v200_v18, %v184_v60  ;;  %v171_v28 = vsel %vm526_vm7, %v168_v39, %v165_v20  ;;  %v212_v30 = vsub.f32 0.0, %v204_v21 }
  0x4a   :  { %v213_v31 = vsub.f32 0.0, %v205_v22  ;;  %v214_v32 = vsub.f32 0.0, %v206_v23  ;;  %v179_v35 = vmax.f32 %v171_v28, -100.0  ;;  %v187_v36 = vmul.f32 %v91_v25, %v67_v17 }
  0x4b   :  { %v209_v37 = vadd.f32 %v201_v19, %v185_v63  ;;  %v215_v34 = vsub.f32 0.0, %v207_v27  ;;  %v210_v41 = vadd.f32 %v202_v26, %v186_v11  ;;  %v216_v42 = vsub.f32 0.0, %v208_v13 }
  0x4c   :  { %v255_v33 = vadd.f32 %v213_v31, %v212_v30  ;;  %v203_v40 = vmul.f32 %v195_v24, %v179_v35 }
  0x4d   :  { %v217_v16 = vsub.f32 0.0, %v209_v37  ;;  %v218_v47 = vsub.f32 0.0, %v210_v41 }
  0x4e   :  { %v256_v43 = vadd.f32 %v255_v33, %v214_v32  ;;  %v211_v44 = vadd.f32 %v203_v40, %v187_v36 }
  0x50   :  { %v257_v46 = vadd.f32 %v256_v43, %v215_v34  ;;  %v219_v39 = vsub.f32 0.0, %v211_v44 }
  0x52   :  { %v258_v45 = vadd.f32 %v257_v46, %v216_v42 }
  0x54   :  { %v259_v48 = vadd.f32 %v258_v45, %v217_v16 }
  0x56   :  { %v260_v49 = vadd.f32 %v259_v48, %v218_v47 }
  0x58   :  { %v261_v50 = vadd.f32 %v260_v49, %v219_v39 }
  0x5a   :  { %262 = vadd.xlane.f32.xlu0 %v261_v50 }
  0xe7   :  { %v263_v51 = vpop.xlane.xlu0 %262 }
  0xe8   :  { %v264_v8 = vrot.slane %v263_v51, 4 }
  0xea   :  { %v265_v25 = vadd.f32 %v264_v8, %v263_v51 }
  0xec   :  { %v266_v52 = vrot.slane %v265_v25, 2 }
  0xee   :  { %v267_v29 = vadd.f32 %v266_v52, %v265_v25 }
  0xf0   :  { %v268_v53 = vrot.slane %v267_v29, 1 }
  0xf2   :  { %v269_v56 = vadd.f32 %v268_v53, %v267_v29 }
  0xf4   :  { %291 = vpush %v269_v56 }
 0x125   :  { %s292_s1 = spop %291 }
 0x126   :  { %s273_s6 = smul.f32 0.00012207031, %s292_s1 }
 0x128   :  { %275 = sst [smem:[#allocation8]] %s273_s6 }
 0x129   :  { %383 = shalt.err (!%p380_p4)
}
 0x12a   :  { %s394_s14 = smov [#allocation8]  }
 0x12b   :  { %283 = dma.smem_to_hbm %s394_s14, 16, %s554_s2, [#allocation5]  }
 0x12c   :  { %388 = dma.done.wait [#allocation5], 16  }
 0x12d   :  { %389 = vsyncadd [#allocation5], 4294967280 }
 0x12e   :  { %287 = sfence }
 0x12f   :  { %288 = vsyncpa [#allocation4], 1 }
 0x130   :  { %289 = vsyncpa [#allocation7], 1 }
 0x131   :  { %290 = vsyncpa [#allocation5], 1 }

</bundles_post_ra>
